<compile_context>
chip_gen: v7x
topology: tpu7x:2x2x1
jax: 0.10.0
libtpu: 0.0.40
codegen_flags: <defaults>
</compile_context>

<pallas_src>
import functools

import jax
import jax.numpy as jnp
from jax.experimental import pallas as pl
from jax.experimental.pallas import tpu as pltpu

LANE = 128
_BIG = 1e30   # Python float -> lowered as a literal (never a captured const)

_VMEM_SPEC = pl.BlockSpec(memory_space=pltpu.MemorySpace.VMEM)


# ---------------------------------------------------------------------------
# Fused kernel: dist -> kNN adjacency -> 3x GCN -> delta head
# ---------------------------------------------------------------------------
def _fused_medusa_kernel(pos8_ref, pos8t_ref, x_ref,
                         w1_ref, w2_ref, w3_ref, wd_ref, bias_ref,
                         out_ref, *, k):
    n = pos8_ref.shape[0]
    inv_deg = 1.0 / float(k + 1)   # every node has degree k+1 (kNN + self loop)

    # ---- pairwise ranking metric from one tiny MXU dot ---------------------
    # For per-row kNN the row term ||p_i||^2 is a constant offset, so rank on
    #   m[i, j] = ||p_j||^2 - 2 p_i . p_j
    gram = jnp.dot(pos8_ref[...], pos8t_ref[...],
                   preferred_element_type=jnp.float32)               # (N, N)
    sq_row = jnp.sum(pos8t_ref[...] * pos8t_ref[...], axis=0,
                     keepdims=True)                                  # (1, N)
    row = jax.lax.broadcasted_iota(jnp.int32, (n, n), 0)
    col = jax.lax.broadcasted_iota(jnp.int32, (n, n), 1)
    work = jnp.where(row == col, _BIG, sq_row - 2.0 * gram)          # diag masked

    # ---- kNN via k-step min/mask loop (k small & static -> unrolled) -------
    for _ in range(k):
        t = jnp.min(work, axis=-1, keepdims=True)                    # (N, 1)
        work = jnp.where(work <= t, _BIG, work)

    # Entries removed by the loop plus the diagonal are exactly A_hat =
    # (k nearest neighbors) + self loops -> one compare, no separate eye add.
    a_bf = jnp.where(work >= _BIG, 1.0, 0.0).astype(jnp.bfloat16)    # (N, N)

    # Symmetric normalization D^-1/2 (A+I) D^-1/2 with deg == k+1 everywhere
    # collapses to a constant scale applied to the f32 MXU accumulation.
    def aggregate(h):
        s = jnp.dot(a_bf, h.astype(jnp.bfloat16),
                    preferred_element_type=jnp.float32)
        return s * inv_deg

    # ---- layer 1: (A_norm @ X) @ W1  (F_in < hidden -> aggregate first) ----
    ax = aggregate(x_ref[...])                                       # (N, F_in)
    h = jnp.dot(ax.astype(jnp.bfloat16), w1_ref[...],
                preferred_element_type=jnp.float32)                  # (N, 128)
    h = jnp.maximum(h + bias_ref[0:1, :], 0.0)
    # TODO(synk): nn.Dropout(p=0.3) is identity in eval mode; training-mode
    # stochastic dropout is intentionally not applied here.

    # ---- layers 2..3: A_norm @ (H @ W) --------------------------------------
    for w_ref, b_row in ((w2_ref, 1), (w3_ref, 2)):
        hw = jnp.dot(h.astype(jnp.bfloat16), w_ref[...],
                     preferred_element_type=jnp.float32)             # (N, 128)
        h = jnp.maximum(aggregate(hw) + bias_ref[b_row:b_row + 1, :], 0.0)

    # ---- delta head (bf16 MXU, f32 accum) into a lane-dense output slab ----
    delta = jnp.dot(h.astype(jnp.bfloat16), wd_ref[...],
                    preferred_element_type=jnp.float32)
    out_ref[...] = delta + bias_ref[3:4, :]


# ---------------------------------------------------------------------------
# One-time parameter packing (call ONCE at init, never per forward call)
# ---------------------------------------------------------------------------
def _pad2(a, shape):
    return jnp.pad(a, [(0, s - d) for d, s in zip(a.shape, shape)])


def pack_params(params):
    (w1, b1), (w2, b2), (w3, b3) = params["gcn"]
    wd, bd = params["fc_delta"]
    f_in, hid = w1.shape
    bias = jnp.zeros((8, LANE), jnp.float32)
    bias = bias.at[0, :hid].set(b1).at[1, :hid].set(b2).at[2, :hid].set(b3)
    bias = bias.at[3, :bd.shape[0]].set(bd)
    return {
        "w1": _pad2(w1, (f_in, LANE)).astype(jnp.bfloat16),
        "w2": _pad2(w2, (LANE, LANE)).astype(jnp.bfloat16),
        "w3": _pad2(w3, (LANE, LANE)).astype(jnp.bfloat16),
        "wd": _pad2(wd, (LANE, LANE)).astype(jnp.bfloat16),
        "bias": bias,
    }


# ---------------------------------------------------------------------------
# Forward wrapper: 2 tiny per-call packing ops, one pallas_call, host residual
# ---------------------------------------------------------------------------
def medusa_graph_forward(packed, x, pos, k):
    n = pos.shape[0]
    f_in = x.shape[1]

    # Per-call data packing only (raw positions in both orientations);
    # norms / augmentation / residual layout are handled in-kernel.
    pos8 = _pad2(pos, (n, 8))              # (N, 8)
    pos8t = _pad2(pos.T, (8, n))           # (8, N)

    flops = (2 * n * n * 8                     # distance gram
             + 2 * n * n * f_in                # layer-1 aggregation
             + 2 * n * f_in * LANE             # layer-1 weight matmul
             + 2 * (2 * n * LANE * LANE + 2 * n * n * LANE)   # layers 2-3
             + 2 * n * LANE * LANE)            # delta head
    bytes_accessed = (pos8.size * 4 + pos8t.size * 4 + x.size * 4
                      + packed["w1"].size * 2 + packed["w2"].size * 2
                      + packed["w3"].size * 2 + packed["wd"].size * 2
                      + packed["bias"].size * 4 + n * LANE * 4)

    out_pad = pl.pallas_call(
        functools.partial(_fused_medusa_kernel, k=k),
        out_shape=jax.ShapeDtypeStruct((n, LANE), jnp.float32),
        in_specs=[_VMEM_SPEC] * 8,
        out_specs=_VMEM_SPEC,
        cost_estimate=pl.CostEstimate(
            flops=flops, transcendentals=0, bytes_accessed=bytes_accessed),
        # TODO(synk): for batched graphs add a leading ("parallel",) grid axis
        # with constant index_maps for the weights (keeps both v7x TCs busy and
        # amortizes weight DMAs on v5e/v6e). For large single graphs, row-tile
        # dist/kNN/aggregation: the dense f32 (N,N) working set stops fitting
        # ~N≈1.3-1.5k on v7x (64 MiB VMEM) vs ~2k+ on v5e/v6e (128 MiB); use
        # TM≈256 on v7x and 512-1024 on v6e/v5e with vmem_limit_bytes raised,
        # keeping the (N,128) bf16 activations fully resident.
    )(pos8, pos8t, x, packed["w1"], packed["w2"], packed["w3"],
      packed["wd"], packed["bias"])

    # Residual add + delta-lane slice done host-side (fuses into the slice).
    return pos + out_pad[:, :3]


# ---------------------------------------------------------------------------
# Pure-JAX reference (f32) for a correctness sanity check
# ---------------------------------------------------------------------------
def medusa_graph_reference(params, x, pos, k):
    n = pos.shape[0]
    d2 = jnp.sum((pos[:, None, :] - pos[None, :, :]) ** 2, axis=-1)
    d2 = jnp.where(jnp.eye(n, dtype=bool), jnp.inf, d2)
    kth = -jax.lax.top_k(-d2, k)[0][:, -1:]
    a_hat = jnp.where(d2 <= kth, 1.0, 0.0) + jnp.eye(n, dtype=jnp.float32)
    dinv = jax.lax.rsqrt(jnp.sum(a_hat, axis=-1, keepdims=True))
    a_norm = dinv * a_hat * dinv.T
    h = x
    for w, b in params["gcn"]:
        h = jax.nn.relu(a_norm @ (h @ w) + b)
    wd, bd = params["fc_delta"]
    return pos + h @ wd + bd


# ---------------------------------------------------------------------------
# Deterministic parameter init (shapes from MedusaGraphModel.__init__)
# ---------------------------------------------------------------------------
def init_params(key, in_features, hidden_dim, num_layers=3):
    def glorot(kk, shape):
        fan_in, fan_out = shape
        lim = (6.0 / (fan_in + fan_out)) ** 0.5
        return jax.random.uniform(kk, shape, jnp.float32, -lim, lim)

    keys = jax.random.split(key, num_layers + 1)
    gcn = []
    fin = in_features
    for i in range(num_layers):
        w = glorot(keys[i], (fin, hidden_dim))
        b = jnp.zeros((hidden_dim,), jnp.float32)
        gcn.append((w, b))
        fin = hidden_dim
    w_delta = glorot(keys[-1], (hidden_dim, 3))
    b_delta = jnp.zeros((3,), jnp.float32)
    return {"gcn": gcn, "fc_delta": (w_delta, b_delta)}


# ---------------------------------------------------------------------------
if __name__ == "__main__":
    N = 64            # number of nodes (single graph, batch=None)
    IN_FEATURES = 16
    HIDDEN = 32
    K = 6

    key = jax.random.PRNGKey(0)
    k_x, k_pos, k_param = jax.random.split(key, 3)
    x = jax.random.normal(k_x, (N, IN_FEATURES), jnp.float32)
    pos = jax.random.normal(k_pos, (N, 3), jnp.float32)
    params = init_params(k_param, IN_FEATURES, HIDDEN)

    packed = pack_params(params)          # one-time packing, outside the jit

    fwd = jax.jit(functools.partial(medusa_graph_forward, k=K))
    refined_pos = fwd(packed, x, pos)
    jax.block_until_ready(refined_pos)

    assert refined_pos.shape == (N, 3)
    assert bool(jnp.all(jnp.isfinite(refined_pos)))

    ref = medusa_graph_reference(params, x, pos, K)
    max_err = float(jnp.max(jnp.abs(refined_pos - ref)))
    assert max_err < 5e-2, f"max abs err vs f32 reference: {max_err}"

    print("KERNEL_OK")
</pallas_src>

<mosaic_0001>
module attributes {stable_mosaic.version = 11 : i64} {
  func.func @_fused_medusa_kernel(%arg0: memref<64x8xf32, #tpu.memory_space<vmem>>, %arg1: memref<8x64xf32, #tpu.memory_space<vmem>>, %arg2: memref<64x16xf32, #tpu.memory_space<vmem>>, %arg3: memref<16x128xbf16, #tpu.memory_space<vmem>>, %arg4: memref<128x128xbf16, #tpu.memory_space<vmem>>, %arg5: memref<128x128xbf16, #tpu.memory_space<vmem>>, %arg6: memref<128x128xbf16, #tpu.memory_space<vmem>>, %arg7: memref<8x128xf32, #tpu.memory_space<vmem>>, %arg8: memref<64x128xf32, #tpu.memory_space<vmem>>) attributes {dimension_semantics = [], scalar_prefetch = 0 : i64, scratch_operands = 0 : i64, tpu.core_type = #tpu.core_type<tc>} {
    %c0 = arith.constant 0 : index
    %c0_0 = arith.constant 0 : index
    %0 = vector.load %arg0[%c0, %c0_0] : memref<64x8xf32, #tpu.memory_space<vmem>>, vector<64x8xf32>
    %c0_1 = arith.constant 0 : index
    %c0_2 = arith.constant 0 : index
    %1 = vector.load %arg1[%c0_1, %c0_2] : memref<8x64xf32, #tpu.memory_space<vmem>>, vector<8x64xf32>
    %cst = arith.constant dense<0.000000e+00> : vector<64x64xf32>
    %2 = tpu.matmul %0, %1, %cst {dimension_numbers = #tpu.dot_dimension_numbers<[1], [0], [0], [1], [0, 0, 1, 1], [], []>} : vector<64x8xf32>, vector<8x64xf32>, vector<64x64xf32> -> vector<64x64xf32>
    %c0_3 = arith.constant 0 : index
    %c0_4 = arith.constant 0 : index
    %3 = vector.load %arg1[%c0_3, %c0_4] : memref<8x64xf32, #tpu.memory_space<vmem>>, vector<8x64xf32>
    %c0_5 = arith.constant 0 : index
    %c0_6 = arith.constant 0 : index
    %4 = vector.load %arg1[%c0_5, %c0_6] : memref<8x64xf32, #tpu.memory_space<vmem>>, vector<8x64xf32>
    %5 = arith.mulf %3, %4 : vector<8x64xf32>
    %cst_7 = arith.constant dense<0.000000e+00> : vector<64xf32>
    %6 = vector.multi_reduction <add>, %5, %cst_7 [0] : vector<8x64xf32> to vector<64xf32>
    %7 = vector.shape_cast %6 : vector<64xf32> to vector<1x64xf32>
    %8 = tpu.iota {dimensions = array<i32: 0>} : vector<64x64xi32>
    %9 = tpu.iota {dimensions = array<i32: 1>} : vector<64x64xi32>
    %10 = arith.cmpi eq, %8, %9 : vector<64x64xi32>
    %cst_8 = arith.constant 2.000000e+00 : f32
    %11 = vector.broadcast %cst_8 : f32 to vector<64x64xf32>
    %12 = arith.mulf %11, %2 : vector<64x64xf32>
    %13 = vector.broadcast %7 : vector<1x64xf32> to vector<64x64xf32>
    %14 = arith.subf %13, %12 : vector<64x64xf32>
    %cst_9 = arith.constant 1.000000e+30 : f32
    %15 = vector.broadcast %cst_9 : f32 to vector<64x64xf32>
    %16 = arith.select %10, %15, %14 : vector<64x64xi1>, vector<64x64xf32>
    %cst_10 = arith.constant dense<0x7F800000> : vector<64xf32>
    %17 = vector.multi_reduction <minimumf>, %16, %cst_10 [1] : vector<64x64xf32> to vector<64xf32>
    %18 = vector.shape_cast %17 : vector<64xf32> to vector<64x1xf32>
    %19 = vector.broadcast %18 : vector<64x1xf32> to vector<64x64xf32>
    %20 = arith.cmpf ole, %16, %19 : vector<64x64xf32>
    %cst_11 = arith.constant 1.000000e+30 : f32
    %21 = vector.broadcast %cst_11 : f32 to vector<64x64xf32>
    %22 = arith.select %20, %21, %16 : vector<64x64xi1>, vector<64x64xf32>
    %cst_12 = arith.constant dense<0x7F800000> : vector<64xf32>
    %23 = vector.multi_reduction <minimumf>, %22, %cst_12 [1] : vector<64x64xf32> to vector<64xf32>
    %24 = vector.shape_cast %23 : vector<64xf32> to vector<64x1xf32>
    %25 = vector.broadcast %24 : vector<64x1xf32> to vector<64x64xf32>
    %26 = arith.cmpf ole, %22, %25 : vector<64x64xf32>
    %cst_13 = arith.constant 1.000000e+30 : f32
    %27 = vector.broadcast %cst_13 : f32 to vector<64x64xf32>
    %28 = arith.select %26, %27, %22 : vector<64x64xi1>, vector<64x64xf32>
    %cst_14 = arith.constant dense<0x7F800000> : vector<64xf32>
    %29 = vector.multi_reduction <minimumf>, %28, %cst_14 [1] : vector<64x64xf32> to vector<64xf32>
    %30 = vector.shape_cast %29 : vector<64xf32> to vector<64x1xf32>
    %31 = vector.broadcast %30 : vector<64x1xf32> to vector<64x64xf32>
    %32 = arith.cmpf ole, %28, %31 : vector<64x64xf32>
    %cst_15 = arith.constant 1.000000e+30 : f32
    %33 = vector.broadcast %cst_15 : f32 to vector<64x64xf32>
    %34 = arith.select %32, %33, %28 : vector<64x64xi1>, vector<64x64xf32>
    %cst_16 = arith.constant dense<0x7F800000> : vector<64xf32>
    %35 = vector.multi_reduction <minimumf>, %34, %cst_16 [1] : vector<64x64xf32> to vector<64xf32>
    %36 = vector.shape_cast %35 : vector<64xf32> to vector<64x1xf32>
    %37 = vector.broadcast %36 : vector<64x1xf32> to vector<64x64xf32>
    %38 = arith.cmpf ole, %34, %37 : vector<64x64xf32>
    %cst_17 = arith.constant 1.000000e+30 : f32
    %39 = vector.broadcast %cst_17 : f32 to vector<64x64xf32>
    %40 = arith.select %38, %39, %34 : vector<64x64xi1>, vector<64x64xf32>
    %cst_18 = arith.constant dense<0x7F800000> : vector<64xf32>
    %41 = vector.multi_reduction <minimumf>, %40, %cst_18 [1] : vector<64x64xf32> to vector<64xf32>
    %42 = vector.shape_cast %41 : vector<64xf32> to vector<64x1xf32>
    %43 = vector.broadcast %42 : vector<64x1xf32> to vector<64x64xf32>
    %44 = arith.cmpf ole, %40, %43 : vector<64x64xf32>
    %cst_19 = arith.constant 1.000000e+30 : f32
    %45 = vector.broadcast %cst_19 : f32 to vector<64x64xf32>
    %46 = arith.select %44, %45, %40 : vector<64x64xi1>, vector<64x64xf32>
    %cst_20 = arith.constant dense<0x7F800000> : vector<64xf32>
    %47 = vector.multi_reduction <minimumf>, %46, %cst_20 [1] : vector<64x64xf32> to vector<64xf32>
    %48 = vector.shape_cast %47 : vector<64xf32> to vector<64x1xf32>
    %49 = vector.broadcast %48 : vector<64x1xf32> to vector<64x64xf32>
    %50 = arith.cmpf ole, %46, %49 : vector<64x64xf32>
    %cst_21 = arith.constant 1.000000e+30 : f32
    %51 = vector.broadcast %cst_21 : f32 to vector<64x64xf32>
    %52 = arith.select %50, %51, %46 : vector<64x64xi1>, vector<64x64xf32>
    %cst_22 = arith.constant 1.000000e+30 : f32
    %53 = vector.broadcast %cst_22 : f32 to vector<64x64xf32>
    %54 = arith.cmpf oge, %52, %53 : vector<64x64xf32>
    %cst_23 = arith.constant 1.000000e+00 : f32
    %cst_24 = arith.constant 0.000000e+00 : f32
    %55 = vector.broadcast %cst_23 : f32 to vector<64x64xf32>
    %56 = vector.broadcast %cst_24 : f32 to vector<64x64xf32>
    %57 = arith.select %54, %55, %56 : vector<64x64xi1>, vector<64x64xf32>
    %58 = arith.truncf %57 : vector<64x64xf32> to vector<64x64xbf16>
    %c0_25 = arith.constant 0 : index
    %c0_26 = arith.constant 0 : index
    %59 = vector.load %arg2[%c0_25, %c0_26] : memref<64x16xf32, #tpu.memory_space<vmem>>, vector<64x16xf32>
    %60 = arith.truncf %59 : vector<64x16xf32> to vector<64x16xbf16>
    %cst_27 = arith.constant dense<0.000000e+00> : vector<64x16xf32>
    %61 = tpu.matmul %58, %60, %cst_27 {dimension_numbers = #tpu.dot_dimension_numbers<[1], [0], [0], [1], [0, 0, 1, 1], [], []>} : vector<64x64xbf16>, vector<64x16xbf16>, vector<64x16xf32> -> vector<64x16xf32>
    %cst_28 = arith.constant 0.142857149 : f32
    %62 = vector.broadcast %cst_28 : f32 to vector<64x16xf32>
    %63 = arith.mulf %61, %62 : vector<64x16xf32>
    %64 = arith.truncf %63 : vector<64x16xf32> to vector<64x16xbf16>
    %c0_29 = arith.constant 0 : index
    %c0_30 = arith.constant 0 : index
    %65 = vector.load %arg3[%c0_29, %c0_30] : memref<16x128xbf16, #tpu.memory_space<vmem>>, vector<16x128xbf16>
    %cst_31 = arith.constant dense<0.000000e+00> : vector<64x128xf32>
    %66 = tpu.matmul %64, %65, %cst_31 {dimension_numbers = #tpu.dot_dimension_numbers<[1], [0], [0], [1], [0, 0, 1, 1], [], []>} : vector<64x16xbf16>, vector<16x128xbf16>, vector<64x128xf32> -> vector<64x128xf32>
    %c0_32 = arith.constant 0 : index
    %c0_33 = arith.constant 0 : index
    %67 = vector.load %arg7[%c0_32, %c0_33] : memref<8x128xf32, #tpu.memory_space<vmem>>, vector<1x128xf32>
    %68 = vector.broadcast %67 : vector<1x128xf32> to vector<64x128xf32>
    %69 = arith.addf %66, %68 : vector<64x128xf32>
    %cst_34 = arith.constant 0.000000e+00 : f32
    %70 = vector.broadcast %cst_34 : f32 to vector<64x128xf32>
    %71 = arith.maximumf %69, %70 : vector<64x128xf32>
    %72 = arith.truncf %71 : vector<64x128xf32> to vector<64x128xbf16>
    %c0_35 = arith.constant 0 : index
    %c0_36 = arith.constant 0 : index
    %73 = vector.load %arg4[%c0_35, %c0_36] : memref<128x128xbf16, #tpu.memory_space<vmem>>, vector<128x128xbf16>
    %cst_37 = arith.constant dense<0.000000e+00> : vector<64x128xf32>
    %74 = tpu.matmul %72, %73, %cst_37 {dimension_numbers = #tpu.dot_dimension_numbers<[1], [0], [0], [1], [0, 0, 1, 1], [], []>} : vector<64x128xbf16>, vector<128x128xbf16>, vector<64x128xf32> -> vector<64x128xf32>
    %75 = arith.truncf %74 : vector<64x128xf32> to vector<64x128xbf16>
    %cst_38 = arith.constant dense<0.000000e+00> : vector<64x128xf32>
    %76 = tpu.matmul %58, %75, %cst_38 {dimension_numbers = #tpu.dot_dimension_numbers<[1], [0], [0], [1], [0, 0, 1, 1], [], []>} : vector<64x64xbf16>, vector<64x128xbf16>, vector<64x128xf32> -> vector<64x128xf32>
    %cst_39 = arith.constant 0.142857149 : f32
    %77 = vector.broadcast %cst_39 : f32 to vector<64x128xf32>
    %78 = arith.mulf %76, %77 : vector<64x128xf32>
    %c1 = arith.constant 1 : index
    %c0_40 = arith.constant 0 : index
    %79 = vector.load %arg7[%c1, %c0_40] : memref<8x128xf32, #tpu.memory_space<vmem>>, vector<1x128xf32>
    %80 = vector.broadcast %79 : vector<1x128xf32> to vector<64x128xf32>
    %81 = arith.addf %78, %80 : vector<64x128xf32>
    %cst_41 = arith.constant 0.000000e+00 : f32
    %82 = vector.broadcast %cst_41 : f32 to vector<64x128xf32>
    %83 = arith.maximumf %81, %82 : vector<64x128xf32>
    %84 = arith.truncf %83 : vector<64x128xf32> to vector<64x128xbf16>
    %c0_42 = arith.constant 0 : index
    %c0_43 = arith.constant 0 : index
    %85 = vector.load %arg5[%c0_42, %c0_43] : memref<128x128xbf16, #tpu.memory_space<vmem>>, vector<128x128xbf16>
    %cst_44 = arith.constant dense<0.000000e+00> : vector<64x128xf32>
    %86 = tpu.matmul %84, %85, %cst_44 {dimension_numbers = #tpu.dot_dimension_numbers<[1], [0], [0], [1], [0, 0, 1, 1], [], []>} : vector<64x128xbf16>, vector<128x128xbf16>, vector<64x128xf32> -> vector<64x128xf32>
    %87 = arith.truncf %86 : vector<64x128xf32> to vector<64x128xbf16>
    %cst_45 = arith.constant dense<0.000000e+00> : vector<64x128xf32>
    %88 = tpu.matmul %58, %87, %cst_45 {dimension_numbers = #tpu.dot_dimension_numbers<[1], [0], [0], [1], [0, 0, 1, 1], [], []>} : vector<64x64xbf16>, vector<64x128xbf16>, vector<64x128xf32> -> vector<64x128xf32>
    %cst_46 = arith.constant 0.142857149 : f32
    %89 = vector.broadcast %cst_46 : f32 to vector<64x128xf32>
    %90 = arith.mulf %88, %89 : vector<64x128xf32>
    %c2 = arith.constant 2 : index
    %c0_47 = arith.constant 0 : index
    %91 = vector.load %arg7[%c2, %c0_47] : memref<8x128xf32, #tpu.memory_space<vmem>>, vector<1x128xf32>
    %92 = vector.broadcast %91 : vector<1x128xf32> to vector<64x128xf32>
    %93 = arith.addf %90, %92 : vector<64x128xf32>
    %cst_48 = arith.constant 0.000000e+00 : f32
    %94 = vector.broadcast %cst_48 : f32 to vector<64x128xf32>
    %95 = arith.maximumf %93, %94 : vector<64x128xf32>
    %96 = arith.truncf %95 : vector<64x128xf32> to vector<64x128xbf16>
    %c0_49 = arith.constant 0 : index
    %c0_50 = arith.constant 0 : index
    %97 = vector.load %arg6[%c0_49, %c0_50] : memref<128x128xbf16, #tpu.memory_space<vmem>>, vector<128x128xbf16>
    %cst_51 = arith.constant dense<0.000000e+00> : vector<64x128xf32>
    %98 = tpu.matmul %96, %97, %cst_51 {dimension_numbers = #tpu.dot_dimension_numbers<[1], [0], [0], [1], [0, 0, 1, 1], [], []>} : vector<64x128xbf16>, vector<128x128xbf16>, vector<64x128xf32> -> vector<64x128xf32>
    %c3 = arith.constant 3 : index
    %c0_52 = arith.constant 0 : index
    %99 = vector.load %arg7[%c3, %c0_52] : memref<8x128xf32, #tpu.memory_space<vmem>>, vector<1x128xf32>
    %100 = vector.broadcast %99 : vector<1x128xf32> to vector<64x128xf32>
    %101 = arith.addf %98, %100 : vector<64x128xf32>
    %c0_53 = arith.constant 0 : index
    %c0_54 = arith.constant 0 : index
    %102 = vector.load %arg8[%c0_53, %c0_54] : memref<64x128xf32, #tpu.memory_space<vmem>>, vector<64x128xf32>
    tpu.vector_store %arg8[%c0_53, %c0_54], %101 {strides = array<i32>} : memref<64x128xf32, #tpu.memory_space<vmem>>, vector<64x128xf32>,
    return
  }
}

</mosaic_0001>

<bundles_post_ra>
// kernel: medusa_graph_forward.1
= control target key start
LH: loop header
LB: loop body
LE: loop exit
PB: predicated region body
PF: predicated region fallthrough
CT: control target
= control target key end

     0   :  { %vm39_vm0 = vcmask 64512   ;;  %vm170_vm1 = vcmask 523264   ;;  %v178_v15 = vlaneseq  ;;  %s1903_s1 = inlined_call_operand.vmem [shape: f32[8,64], index: 1, kind: input, shape index: {}]   ;;  %s1904_s0 = inlined_call_operand.vmem [shape: f32[64,8], index: 0, kind: input, shape index: {}]   ;;  %s1905_s2 = inlined_call_operand.vmem [shape: f32[64,16], index: 2, kind: input, shape index: {}]   ;;  %s1906_s3 = inlined_call_operand.vmem [shape: bf16[16,128], index: 3, kind: input, shape index: {}]   ;;  %s1907_s4 = inlined_call_operand.vmem [shape: bf16[128,128], index: 4, kind: input, shape index: {}]   ;;  %s1908_s7 = inlined_call_operand.vmem [shape: f32[8,128], index: 7, kind: input, shape index: {}]   ;;  %s1909_s5 = inlined_call_operand.vmem [shape: bf16[128,128], index: 5, kind: input, shape index: {}]   ;;  %s1910_s6 = inlined_call_operand.vmem [shape: bf16[128,128], index: 6, kind: input, shape index: {}]   ;;  %s1911_s8 = inlined_call_operand.vmem [shape: f32[64,128], index: 8, kind: output, shape index: {}]  }
   0x1   :  { %v38_v0 = vld [vmem:[%s1903_s1] sm:$0xff]  ;;  %v31_v2 = vld [vmem:[%s1904_s0 + $0x8] sm:$0xff]  ;;  %v32_v3 = vld [vmem:[%s1904_s0 + $0x10] sm:$0xff] }
   0x2   :  { %v30_v1 = vld [vmem:[%s1904_s0] sm:$0xff]  ;;  %1420 = vmatprep.subr.mxu0 %v38_v0  ;;  %v33_v4 = vld [vmem:[%s1904_s0 + $0x18] sm:$0xff]  ;;  %v35_v6 = vld [vmem:[%s1904_s0 + $0x28] sm:$0xff]  ;;  %v169_v9 = vmul.f32 %v38_v0, %v38_v0  ;;  %v179_v17 = vshrl.u32 %v178_v15, 7  ;;  %v188_v19 = vand.u32 127, %v178_v15 }
   0x3   :  { %1422 = vmatprep.mubr.msk.f32.mxu0 %vm39_vm0, %v30_v1  ;;  %1421 = vmatpush3.msra.mxu0 %v38_v0  ;;  %v34_v5 = vld [vmem:[%s1904_s0 + $0x20] sm:$0xff]  ;;  %v36_v7 = vld [vmem:[%s1904_s0 + $0x30] sm:$0xff]  ;;  %v37_v8 = vld [vmem:[%s1904_s0 + $0x38] sm:$0xff] }
   0x4   :  { %1423 = vmatmul.mubr.msk.f32.vlgmr.msra.gmra.mrb[0].mxu0 %vm39_vm0, %v31_v2  ;;  %v171_v10 = vsel %vm170_vm1, %v169_v9, 0.0  ;;  %v180_v23 = vadd.s32 8, %v179_v17  ;;  %v182_v25 = vadd.s32 24, %v179_v17  ;;  %vm189_vm2 = vcmp.eq.s32.totalorder %v179_v17, %v188_v19 }
   0x5   :  { %1425 = vmatprep.mubr.msk.f32.mxu0 %vm39_vm0, %v32_v3  ;;  %v172_v11 = vrot.slane %v171_v10, 4  ;;  %v181_v29 = vadd.s32 16, %v179_v17  ;;  %v183_v32 = vadd.s32 32, %v179_v17  ;;  %v184_v35 = vadd.s32 40, %v179_v17 }
   0x6   :  { %vm190_vm3 = vcmp.eq.s32.totalorder %v180_v23, %v188_v19  ;;  %vm192_vm4 = vcmp.eq.s32.totalorder %v182_v25, %v188_v19  ;;  %v186_v46 = vadd.s32 56, %v179_v17  ;;  %v185_v50 = vadd.s32 48, %v179_v17 }
   0x7   :  { %v173_v12 = vadd.f32 %v172_v11, %v171_v10  ;;  %vm191_vm5 = vcmp.eq.s32.totalorder %v181_v29, %v188_v19  ;;  %vm193_vm6 = vcmp.eq.s32.totalorder %v183_v32, %v188_v19  ;;  %vm194_vm7 = vcmp.eq.s32.totalorder %v184_v35, %v188_v19 }
   0x8   :  { %1426 = vmatmul.mubr.msk.f32.gmra.mrb[2].mxu0 %vm39_vm0, %v33_v4  ;;  %vm196_vm8 = vcmp.eq.s32.totalorder %v186_v46, %v188_v19  ;;  %vm195_vm9 = vcmp.eq.s32.totalorder %v185_v50, %v188_v19 }
   0x9   :  { %1428 = vmatprep.mubr.msk.f32.mxu0 %vm39_vm0, %v34_v5  ;;  %v174_v13 = vrot.slane %v173_v12, 2 }
   0xb   :  { %v175_v14 = vadd.f32 %v174_v13, %v173_v12 }
   0xc   :  { %1429 = vmatmul.mubr.msk.f32.gmra.mrb[4].mxu0 %vm39_vm0, %v35_v6 }
   0xd   :  { %1431 = vmatprep.mubr.msk.f32.mxu0 %vm39_vm0, %v36_v7  ;;  %v176_v16 = vrot.slane %v175_v14, 1 }
   0xf   :  { %v177_v18 = vadd.f32 %v176_v16, %v175_v14 }
  0x10   :  { %1432 = vmatmul.mubr.msk.f32.gmra.mrb[6].mxu0 %vm39_vm0, %v37_v8 }
  0xd7   :  { %v1424_v20 = vpop.f32.mrb[0].mxu0 }
  0xd8   :  { %v198_v21 = vmul.f32 2.0, %v1424_v20  ;;  %v130_v22 = vpop.f32.mrb[1].mxu0 }
  0xd9   :  { %v197_v24 = vmul.f32 2.0, %v130_v22 }
  0xda   :  { %v206_v26 = vsub.f32 %v177_v18, %v198_v21 }
  0xdb   :  { %v205_v27 = vsub.f32 %v177_v18, %v197_v24  ;;  %v1427_v28 = vpop.f32.mrb[2].mxu0 }
  0xdc   :  { %v200_v30 = vmul.f32 2.0, %v1427_v28  ;;  %v140_v31 = vpop.f32.mrb[3].mxu0  ;;  %v214_v40 = vsel %vm190_vm3, 1e+30, %v206_v26 }
  0xdd   :  { %v199_v33 = vmul.f32 2.0, %v140_v31  ;;  %v213_v34 = vsel %vm189_vm2, 1e+30, %v205_v27  ;;  %v224_v48 = vsel %vm170_vm1, %v214_v40, inf }
  0xde   :  { %v208_v36 = vsub.f32 %v177_v18, %v200_v30  ;;  %v221_v37 = vsel %vm170_vm1, %v213_v34, inf }
  0xdf   :  { %v207_v38 = vsub.f32 %v177_v18, %v199_v33  ;;  %222 = vmin.xlane.f32.xlu0 %v221_v37  ;;  %v1430_v39 = vpop.f32.mrb[4].mxu0 }
  0xe0   :  { %v202_v41 = vmul.f32 2.0, %v1430_v39  ;;  %v150_v42 = vpop.f32.mrb[5].mxu0  ;;  %v216_v43 = vsel %vm192_vm4, 1e+30, %v208_v36 }
  0xe1   :  { %v201_v44 = vmul.f32 2.0, %v150_v42  ;;  %v230_v45 = vsel %vm170_vm1, %v216_v43, inf  ;;  %v215_v49 = vsel %vm191_vm5, 1e+30, %v207_v38 }
  0xe2   :  { %v210_v47 = vsub.f32 %v177_v18, %v202_v41  ;;  %231 = vmin.xlane.f32.xlu1 %v230_v45  ;;  %v227_v57 = vsel %vm170_vm1, %v215_v49, inf }
  0xe3   :  { %v209_v51 = vsub.f32 %v177_v18, %v201_v44  ;;  %225 = vmin.xlane.f32.xlu0 %v224_v48  ;;  %v1433_v52 = vpop.f32.mrb[6].mxu0 }
  0xe4   :  { %v204_v53 = vmul.f32 2.0, %v1433_v52  ;;  %v160_v54 = vpop.f32.mrb[7].mxu0  ;;  %v218_v55 = vsel %vm194_vm7, 1e+30, %v210_v47 }
  0xe5   :  { %v203_v56 = vmul.f32 2.0, %v160_v54  ;;  %v217_v58 = vsel %vm193_vm6, 1e+30, %v209_v51  ;;  %v236_v62 = vsel %vm170_vm1, %v218_v55, inf }
  0xe6   :  { %v212_v59 = vsub.f32 %v177_v18, %v204_v53  ;;  %228 = vmin.xlane.f32.xlu1 %v227_v57  ;;  %v233_v60 = vsel %vm170_vm1, %v217_v58, inf }
  0xe7   :  { %v211_v61 = vsub.f32 %v177_v18, %v203_v56  ;;  %234 = vmin.xlane.f32.xlu0 %v233_v60 }
  0xe8   :  { %v220_v63 = vsel %vm196_vm8, 1e+30, %v212_v59 }
  0xe9   :  { %v219_v0 = vsel %vm195_vm9, 1e+30, %v211_v61  ;;  %v242_v2 = vsel %vm170_vm1, %v220_v63, inf }
  0xea   :  { %237 = vmin.xlane.f32.xlu1 %v236_v62  ;;  %v239_v1 = vsel %vm170_vm1, %v219_v0, inf }
  0xeb   :  { %240 = vmin.xlane.f32.xlu0 %v239_v1 }
  0xee   :  { %243 = vmin.xlane.f32.xlu1 %v242_v2 }
 0x16c   :  { %v223_v3 = vpop.xlane.xlu0 %222 }
 0x16d   :  { %vm245_vm10 = vcmp.le.f32.partialorder %v213_v34, %v223_v3 }
 0x16e   :  { %v253_v4 = vsel %vm245_vm10, 1e+30, %v213_v34 }
 0x16f   :  { %v232_v5 = vpop.xlane.xlu1 %231  ;;  %v261_v6 = vsel %vm170_vm1, %v253_v4, inf }
 0x170   :  { %v226_v7 = vpop.xlane.xlu0 %225  ;;  %262 = vmin.xlane.f32.xlu0 %v261_v6  ;;  %vm248_vm11 = vcmp.le.f32.partialorder %v216_v43, %v232_v5 }
 0x171   :  { %vm246_vm12 = vcmp.le.f32.partialorder %v214_v40, %v226_v7  ;;  %v256_v11 = vsel %vm248_vm11, 1e+30, %v216_v43 }
 0x172   :  { %v254_v8 = vsel %vm246_vm12, 1e+30, %v214_v40  ;;  %v270_v17 = vsel %vm170_vm1, %v256_v11, inf }
 0x173   :  { %v229_v9 = vpop.xlane.xlu1 %228  ;;  %v264_v10 = vsel %vm170_vm1, %v254_v8, inf }
 0x174   :  { %vm247_vm13 = vcmp.le.f32.partialorder %v215_v49, %v229_v9  ;;  %v235_v12 = vpop.xlane.xlu0 %234  ;;  %265 = vmin.xlane.f32.xlu1 %v264_v10 }
 0x175   :  { %v255_v13 = vsel %vm247_vm13, 1e+30, %v215_v49  ;;  %vm249_vm14 = vcmp.le.f32.partialorder %v217_v58, %v235_v12 }
 0x176   :  { %v267_v14 = vsel %vm170_vm1, %v255_v13, inf  ;;  %v257_v15 = vsel %vm249_vm14, 1e+30, %v217_v58 }
 0x177   :  { %v238_v16 = vpop.xlane.xlu1 %237  ;;  %268 = vmin.xlane.f32.xlu0 %v267_v14  ;;  %v273_v20 = vsel %vm170_vm1, %v257_v15, inf }
 0x178   :  { %vm250_vm15 = vcmp.le.f32.partialorder %v218_v55, %v238_v16  ;;  %271 = vmin.xlane.f32.xlu1 %v270_v17  ;;  %v241_v18 = vpop.xlane.xlu0 %240 }
 0x179   :  { %v258_v19 = vsel %vm250_vm15, 1e+30, %v218_v55  ;;  %vm251_vm0 = vcmp.le.f32.partialorder %v219_v0, %v241_v18 }
 0x17a   :  { %v276_v21 = vsel %vm170_vm1, %v258_v19, inf  ;;  %v259_v22 = vsel %vm251_vm0, 1e+30, %v219_v0 }
 0x17b   :  { %v244_v23 = vpop.xlane.xlu1 %243  ;;  %274 = vmin.xlane.f32.xlu0 %v273_v20  ;;  %v279_v25 = vsel %vm170_vm1, %v259_v22, inf }
 0x17c   :  { %vm252_vm2 = vcmp.le.f32.partialorder %v220_v63, %v244_v23  ;;  %277 = vmin.xlane.f32.xlu1 %v276_v21 }
 0x17d   :  { %v260_v24 = vsel %vm252_vm2, 1e+30, %v220_v63 }
 0x17e   :  { %v282_v26 = vsel %vm170_vm1, %v260_v24, inf }
 0x17f   :  { %280 = vmin.xlane.f32.xlu0 %v279_v25 }
 0x180   :  { %283 = vmin.xlane.f32.xlu1 %v282_v26 }
 0x1fd   :  { %v263_v27 = vpop.xlane.xlu0 %262 }
 0x1fe   :  { %vm285_vm3 = vcmp.le.f32.partialorder %v253_v4, %v263_v27 }
 0x1ff   :  { %v293_v28 = vsel %vm285_vm3, 1e+30, %v253_v4 }
 0x200   :  { %v301_v29 = vsel %vm170_vm1, %v293_v28, inf }
 0x201   :  { %v266_v30 = vpop.xlane.xlu1 %265  ;;  %302 = vmin.xlane.f32.xlu0 %v301_v29 }
 0x202   :  { %vm286_vm4 = vcmp.le.f32.partialorder %v254_v8, %v266_v30 }
 0x203   :  { %v294_v31 = vsel %vm286_vm4, 1e+30, %v254_v8 }
 0x204   :  { %v269_v32 = vpop.xlane.xlu0 %268  ;;  %v304_v33 = vsel %vm170_vm1, %v294_v31, inf }
 0x205   :  { %vm287_vm5 = vcmp.le.f32.partialorder %v255_v13, %v269_v32  ;;  %305 = vmin.xlane.f32.xlu1 %v304_v33  ;;  %v272_v34 = vpop.xlane.xlu1 %271 }
 0x206   :  { %v295_v35 = vsel %vm287_vm5, 1e+30, %v255_v13  ;;  %vm288_vm6 = vcmp.le.f32.partialorder %v256_v11, %v272_v34 }
 0x207   :  { %v296_v36 = vsel %vm288_vm6, 1e+30, %v256_v11  ;;  %v307_v37 = vsel %vm170_vm1, %v295_v35, inf }
 0x208   :  { %308 = vmin.xlane.f32.xlu0 %v307_v37  ;;  %v275_v38 = vpop.xlane.xlu0 %274  ;;  %v310_v39 = vsel %vm170_vm1, %v296_v36, inf }
 0x209   :  { %vm289_vm7 = vcmp.le.f32.partialorder %v257_v15, %v275_v38  ;;  %311 = vmin.xlane.f32.xlu1 %v310_v39  ;;  %v278_v40 = vpop.xlane.xlu1 %277 }
 0x20a   :  { %v297_v41 = vsel %vm289_vm7, 1e+30, %v257_v15  ;;  %vm290_vm8 = vcmp.le.f32.partialorder %v258_v19, %v278_v40 }
 0x20b   :  { %v298_v42 = vsel %vm290_vm8, 1e+30, %v258_v19  ;;  %v313_v43 = vsel %vm170_vm1, %v297_v41, inf }
 0x20c   :  { %314 = vmin.xlane.f32.xlu0 %v313_v43  ;;  %v281_v44 = vpop.xlane.xlu0 %280  ;;  %v316_v45 = vsel %vm170_vm1, %v298_v42, inf }
 0x20d   :  { %vm291_vm9 = vcmp.le.f32.partialorder %v259_v22, %v281_v44  ;;  %317 = vmin.xlane.f32.xlu1 %v316_v45  ;;  %v284_v46 = vpop.xlane.xlu1 %283 }
 0x20e   :  { %v299_v47 = vsel %vm291_vm9, 1e+30, %v259_v22  ;;  %vm292_vm10 = vcmp.le.f32.partialorder %v260_v24, %v284_v46 }
 0x20f   :  { %v300_v48 = vsel %vm292_vm10, 1e+30, %v260_v24  ;;  %v319_v49 = vsel %vm170_vm1, %v299_v47, inf }
 0x210   :  { %320 = vmin.xlane.f32.xlu0 %v319_v49  ;;  %v322_v50 = vsel %vm170_vm1, %v300_v48, inf }
 0x211   :  { %323 = vmin.xlane.f32.xlu1 %v322_v50 }
 0x28e   :  { %v303_v51 = vpop.xlane.xlu0 %302 }
 0x28f   :  { %vm325_vm11 = vcmp.le.f32.partialorder %v293_v28, %v303_v51 }
 0x290   :  { %v333_v52 = vsel %vm325_vm11, 1e+30, %v293_v28 }
 0x291   :  { %v341_v53 = vsel %vm170_vm1, %v333_v52, inf }
 0x292   :  { %v306_v54 = vpop.xlane.xlu1 %305  ;;  %342 = vmin.xlane.f32.xlu0 %v341_v53 }
 0x293   :  { %vm326_vm12 = vcmp.le.f32.partialorder %v294_v31, %v306_v54 }
 0x294   :  { %v334_v55 = vsel %vm326_vm12, 1e+30, %v294_v31 }
 0x295   :  { %v309_v56 = vpop.xlane.xlu0 %308  ;;  %v344_v57 = vsel %vm170_vm1, %v334_v55, inf }
 0x296   :  { %vm327_vm13 = vcmp.le.f32.partialorder %v295_v35, %v309_v56  ;;  %345 = vmin.xlane.f32.xlu1 %v344_v57  ;;  %v312_v58 = vpop.xlane.xlu1 %311 }
 0x297   :  { %v335_v59 = vsel %vm327_vm13, 1e+30, %v295_v35  ;;  %vm328_vm14 = vcmp.le.f32.partialorder %v296_v36, %v312_v58  ;;  %v481_v35 = vld [vmem:[%s1905_s2] sm:$0xff] }
 0x298   :  { %v336_v60 = vsel %vm328_vm14, 1e+30, %v296_v36  ;;  %v347_v61 = vsel %vm170_vm1, %v335_v59, inf  ;;  %v482_v36 = vld [vmem:[%s1905_s2 + $0x8] sm:$0xff] }
 0x299   :  { %348 = vmin.xlane.f32.xlu0 %v347_v61  ;;  %v315_v62 = vpop.xlane.xlu0 %314  ;;  %v350_v63 = vsel %vm170_vm1, %v336_v60, inf  ;;  %v489_v37 = vpack.c.bf16 %v482_v36, %v481_v35 }
 0x29a   :  { %vm329_vm15 = vcmp.le.f32.partialorder %v297_v41, %v315_v62  ;;  %351 = vmin.xlane.f32.xlu1 %v350_v63  ;;  %v318_v0 = vpop.xlane.xlu1 %317 }
 0x29b   :  { %v337_v1 = vsel %vm329_vm15, 1e+30, %v297_v41  ;;  %vm330_vm0 = vcmp.le.f32.partialorder %v298_v42, %v318_v0  ;;  %1434 = vmatprep.subr.bf16.mxu0 %v489_v37 }
 0x29c   :  { %v338_v2 = vsel %vm330_vm0, 1e+30, %v298_v42  ;;  %v353_v3 = vsel %vm170_vm1, %v337_v1, inf  ;;  %1435 = vmatpush3.bf16.msra.mxu0 %v489_v37  ;;  %v1566_v37 = vld [vmem:[%s1907_s4] sm:$0xff]  }
 0x29d   :  { %354 = vmin.xlane.f32.xlu0 %v353_v3  ;;  %v321_v4 = vpop.xlane.xlu0 %320  ;;  %v356_v5 = vsel %vm170_vm1, %v338_v2, inf  ;;  %1460 = vmatprep.subr.bf16.mxu1 %v1566_v37 }
 0x29e   :  { %vm331_vm2 = vcmp.le.f32.partialorder %v299_v47, %v321_v4  ;;  %357 = vmin.xlane.f32.xlu1 %v356_v5  ;;  %v324_v6 = vpop.xlane.xlu1 %323  ;;  %v487_v4 = vld [vmem:[%s1905_s2 + $0x30] sm:$0xff]  ;;  %v488_v5 = vld [vmem:[%s1905_s2 + $0x38] sm:$0xff]  ;;  %1461 = vmatpush3.bf16.msra.mxu1 %v1566_v37 }
 0x29f   :  { %v339_v7 = vsel %vm331_vm2, 1e+30, %v299_v47  ;;  %vm332_vm3 = vcmp.le.f32.partialorder %v300_v48, %v324_v6  ;;  %v492_v6 = vpack.c.bf16 %v488_v5, %v487_v4 }
 0x2a0   :  { %v340_v8 = vsel %vm332_vm3, 1e+30, %v300_v48  ;;  %v359_v9 = vsel %vm170_vm1, %v339_v7, inf }
 0x2a1   :  { %360 = vmin.xlane.f32.xlu0 %v359_v9  ;;  %v362_v10 = vsel %vm170_vm1, %v340_v8, inf }
 0x2a2   :  { %363 = vmin.xlane.f32.xlu1 %v362_v10 }
 0x31f   :  { %v343_v11 = vpop.xlane.xlu0 %342 }
 0x320   :  { %vm365_vm4 = vcmp.le.f32.partialorder %v333_v52, %v343_v11 }
 0x321   :  { %v373_v12 = vsel %vm365_vm4, 1e+30, %v333_v52 }
 0x322   :  { %v381_v13 = vsel %vm170_vm1, %v373_v12, inf }
 0x323   :  { %v346_v14 = vpop.xlane.xlu1 %345  ;;  %382 = vmin.xlane.f32.xlu0 %v381_v13  ;;  %v1590_v13 = vmov 0.0  }
 0x324   :  { %vm366_vm5 = vcmp.le.f32.partialorder %v334_v55, %v346_v14 }
 0x325   :  { %v374_v15 = vsel %vm366_vm5, 1e+30, %v334_v55 }
 0x326   :  { %v349_v16 = vpop.xlane.xlu0 %348  ;;  %v384_v17 = vsel %vm170_vm1, %v374_v15, inf }
 0x327   :  { %vm367_vm6 = vcmp.le.f32.partialorder %v335_v59, %v349_v16  ;;  %385 = vmin.xlane.f32.xlu1 %v384_v17  ;;  %v352_v18 = vpop.xlane.xlu1 %351 }
 0x328   :  { %v375_v19 = vsel %vm367_vm6, 1e+30, %v335_v59  ;;  %vm368_vm7 = vcmp.le.f32.partialorder %v336_v60, %v352_v18  ;;  %v483_v59 = vld [vmem:[%s1905_s2 + $0x10] sm:$0xff] }
 0x329   :  { %v376_v20 = vsel %vm368_vm7, 1e+30, %v336_v60  ;;  %v387_v21 = vsel %vm170_vm1, %v375_v19, inf  ;;  %v484_v60 = vld [vmem:[%s1905_s2 + $0x18] sm:$0xff] }
 0x32a   :  { %388 = vmin.xlane.f32.xlu0 %v387_v21  ;;  %v355_v22 = vpop.xlane.xlu0 %354  ;;  %v390_v23 = vsel %vm170_vm1, %v376_v20, inf  ;;  %v490_v63 = vpack.c.bf16 %v484_v60, %v483_v59 }
 0x32b   :  { %vm369_vm8 = vcmp.le.f32.partialorder %v337_v1, %v355_v22  ;;  %391 = vmin.xlane.f32.xlu1 %v390_v23  ;;  %v358_v24 = vpop.xlane.xlu1 %357 }
 0x32c   :  { %v377_v25 = vsel %vm369_vm8, 1e+30, %v337_v1  ;;  %vm370_vm9 = vcmp.le.f32.partialorder %v338_v2, %v358_v24  ;;  %1436 = vmatprep.subr.bf16.mxu0 %v490_v63  ;;  %v485_v1 = vld [vmem:[%s1905_s2 + $0x20] sm:$0xff] }
 0x32d   :  { %v378_v26 = vsel %vm370_vm9, 1e+30, %v338_v2  ;;  %v393_v27 = vsel %vm170_vm1, %v377_v25, inf  ;;  %1437 = vmatpush3.bf16.msra.mxu0 %v490_v63  ;;  %v486_v2 = vld [vmem:[%s1905_s2 + $0x28] sm:$0xff]  ;;  %v1572_v63 = vld [vmem:[%s1907_s4 + $0x30] sm:$0xff]  }
 0x32e   :  { %394 = vmin.xlane.f32.xlu0 %v393_v27  ;;  %v361_v28 = vpop.xlane.xlu0 %360  ;;  %v396_v29 = vsel %vm170_vm1, %v378_v26, inf  ;;  %v491_v3 = vpack.c.bf16 %v486_v2, %v485_v1  ;;  %v1305_v1 = vld [vmem:[%s1908_s7] ss:$0 sm:$0xff] }
 0x32f   :  { %vm371_vm10 = vcmp.le.f32.partialorder %v339_v7, %v361_v28  ;;  %397 = vmin.xlane.f32.xlu1 %v396_v29  ;;  %v364_v30 = vpop.xlane.xlu1 %363 }
 0x330   :  { %v379_v31 = vsel %vm371_vm10, 1e+30, %v339_v7  ;;  %vm372_vm11 = vcmp.le.f32.partialorder %v340_v8, %v364_v30  ;;  %1438 = vmatprep.subr.bf16.mxu0 %v491_v3  ;;  %v1565_v7 = vld [vmem:[%s1906_s3] sm:$0xff]  }
 0x331   :  { %v380_v32 = vsel %vm372_vm11, 1e+30, %v340_v8  ;;  %v399_v33 = vsel %vm170_vm1, %v379_v31, inf  ;;  %1439 = vmatpush3.bf16.msra.mxu0 %v491_v3 }
 0x332   :  { %400 = vmin.xlane.f32.xlu0 %v399_v33  ;;  %v402_v34 = vsel %vm170_vm1, %v380_v32, inf  ;;  %1440 = vmatprep.subr.bf16.mxu0 %v492_v6 }
 0x333   :  { %403 = vmin.xlane.f32.xlu1 %v402_v34 }
 0x335   :  { %1441 = vmatpush3.bf16.msra.mxu0 %v492_v6 }
 0x336   :  { %1450 = vmatprep.subr.bf16.mxu0 %v1565_v7 }
 0x3b0   :  { %v383_v38 = vpop.xlane.xlu0 %382 }
 0x3b1   :  { %vm405_vm12 = vcmp.le.f32.partialorder %v373_v12, %v383_v38  ;;  %v1567_v38 = vld [vmem:[%s1907_s4 + $0x8] sm:$0xff]  }
 0x3b2   :  { %v413_v39 = vsel %vm405_vm12, 1e+30, %v373_v12  ;;  %1462 = vmatprep.subr.bf16.mxu1 %v1567_v38 }
 0x3b3   :  { %v421_v40 = vsel %vm170_vm1, %v413_v39, inf  ;;  %1463 = vmatpush3.bf16.msra.mxu1 %v1567_v38 }
 0x3b4   :  { %v386_v41 = vpop.xlane.xlu1 %385  ;;  %422 = vmin.xlane.f32.xlu0 %v421_v40  ;;  %v1569_v40 = vld [vmem:[%s1907_s4 + $0x18] sm:$0xff]  }
 0x3b5   :  { %vm406_vm13 = vcmp.le.f32.partialorder %v374_v15, %v386_v41  ;;  %v1570_v41 = vld [vmem:[%s1907_s4 + $0x20] sm:$0xff]  }
 0x3b6   :  { %v414_v42 = vsel %vm406_vm13, 1e+30, %v374_v15 }
 0x3b7   :  { %v389_v43 = vpop.xlane.xlu0 %388  ;;  %v424_v44 = vsel %vm170_vm1, %v414_v42, inf }
 0x3b8   :  { %vm407_vm14 = vcmp.le.f32.partialorder %v375_v19, %v389_v43  ;;  %425 = vmin.xlane.f32.xlu1 %v424_v44  ;;  %v392_v45 = vpop.xlane.xlu1 %391 }
 0x3b9   :  { %v415_v46 = vsel %vm407_vm14, 1e+30, %v375_v19  ;;  %vm408_vm15 = vcmp.le.f32.partialorder %v376_v20, %v392_v45 }
 0x3ba   :  { %v416_v47 = vsel %vm408_vm15, 1e+30, %v376_v20  ;;  %v427_v48 = vsel %vm170_vm1, %v415_v46, inf }
 0x3bb   :  { %428 = vmin.xlane.f32.xlu0 %v427_v48  ;;  %v395_v49 = vpop.xlane.xlu0 %394  ;;  %v430_v50 = vsel %vm170_vm1, %v416_v47, inf }
 0x3bc   :  { %vm409_vm0 = vcmp.le.f32.partialorder %v377_v25, %v395_v49  ;;  %431 = vmin.xlane.f32.xlu1 %v430_v50  ;;  %v398_v51 = vpop.xlane.xlu1 %397 }
 0x3bd   :  { %v417_v52 = vsel %vm409_vm0, 1e+30, %v377_v25  ;;  %vm410_vm2 = vcmp.le.f32.partialorder %v378_v26, %v398_v51 }
 0x3be   :  { %v1723_v53 = vsel %vm410_vm2, 1e+30, %v378_v26  ;;  %v433_v54 = vsel %vm170_vm1, %v417_v52, inf }
 0x3bf   :  { %434 = vmin.xlane.f32.xlu0 %v433_v54  ;;  %v401_v55 = vpop.xlane.xlu0 %400  ;;  %v436_v56 = vsel %vm170_vm1, %v1723_v53, inf }
 0x3c0   :  { %vm411_vm3 = vcmp.le.f32.partialorder %v379_v31, %v401_v55  ;;  %437 = vmin.xlane.f32.xlu1 %v436_v56  ;;  %v404_v57 = vpop.xlane.xlu1 %403 }
 0x3c1   :  { %v1728_v58 = vsel %vm411_vm3, 1e+30, %v379_v31  ;;  %vm412_vm4 = vcmp.le.f32.partialorder %v380_v32, %v404_v57 }
 0x3c2   :  { %v1736_v61 = vsel %vm412_vm4, 1e+30, %v380_v32  ;;  %v439_v62 = vsel %vm170_vm1, %v1728_v58, inf }
 0x3c3   :  { %440 = vmin.xlane.f32.xlu0 %v439_v62  ;;  %v442_v0 = vsel %vm170_vm1, %v1736_v61, inf }
 0x3c4   :  { %443 = vmin.xlane.f32.xlu1 %v442_v0  ;;  %v1573_v0 = vld [vmem:[%s1907_s4 + $0x38] sm:$0xff]  }
 0x441   :  { %v423_v8 = vpop.xlane.xlu0 %422 }
 0x442   :  { %vm445_vm5 = vcmp.le.f32.partialorder %v413_v39, %v423_v8 }
 0x443   :  { %v453_v9 = vsel %vm445_vm5, 1e+30, %v413_v39  ;;  %v1568_v39 = vld [vmem:[%s1907_s4 + $0x10] sm:$0xff]  }
 0x444   :  { %vm461_vm6 = vcmp.ge.f32.partialorder %v453_v9, 1e+30  ;;  %1464 = vmatprep.subr.bf16.mxu1 %v1568_v39 }
 0x445   :  { %v426_v10 = vpop.xlane.xlu1 %425  ;;  %v469_v14 = vsel %vm461_vm6, 1.0, %v1590_v13  ;;  %1465 = vmatpush3.bf16.msra.mxu1 %v1568_v39  ;;  %vm595_vm6 = vcmask 130048  }
 0x446   :  { %vm446_vm7 = vcmp.le.f32.partialorder %v414_v42, %v426_v10  ;;  %1466 = vmatprep.subr.bf16.mxu1 %v1569_v40 }
 0x447   :  { %v454_v11 = vsel %vm446_vm7, 1e+30, %v414_v42  ;;  %v1571_v42 = vld [vmem:[%s1907_s4 + $0x28] sm:$0xff]  }
 0x448   :  { %vm462_vm8 = vcmp.ge.f32.partialorder %v454_v11, 1e+30  ;;  %v429_v12 = vpop.xlane.xlu0 %428 }
 0x449   :  { %v470_v15 = vsel %vm462_vm8, 1.0, %v1590_v13  ;;  %vm447_vm9 = vcmp.le.f32.partialorder %v415_v46, %v429_v12  ;;  %v432_v16 = vpop.xlane.xlu1 %431  ;;  %1467 = vmatpush3.bf16.msra.mxu1 %v1569_v40 }
 0x44a   :  { %v1757_v17 = vpack.c.bf16 %v470_v15, %v469_v14  ;;  %v455_v18 = vsel %vm447_vm9, 1e+30, %v415_v46  ;;  %vm448_vm10 = vcmp.le.f32.partialorder %v416_v47, %v432_v16  ;;  %1468 = vmatprep.subr.bf16.mxu1 %v1570_v41 }
 0x44b   :  { %vm463_vm11 = vcmp.ge.f32.partialorder %v455_v18, 1e+30  ;;  %v456_v19 = vsel %vm448_vm10, 1e+30, %v416_v47 }
 0x44c   :  { %v471_v20 = vsel %vm463_vm11, 1.0, %v1590_v13  ;;  %vm464_vm12 = vcmp.ge.f32.partialorder %v456_v19, 1e+30  ;;  %1442 = vmatprep.mubr.msk.bf16.mxu0 %vm170_vm1, %v1757_v17  ;;  %v435_v21 = vpop.xlane.xlu0 %434 }
 0x44d   :  { %v472_v22 = vsel %vm464_vm12, 1.0, %v1590_v13  ;;  %vm449_vm13 = vcmp.le.f32.partialorder %v417_v52, %v435_v21  ;;  %v438_v23 = vpop.xlane.xlu1 %437  ;;  %1469 = vmatpush3.bf16.msra.mxu1 %v1570_v41 }
 0x44e   :  { %v1761_v24 = vpack.c.bf16 %v472_v22, %v471_v20  ;;  %v457_v25 = vsel %vm449_vm13, 1e+30, %v417_v52  ;;  %vm450_vm14 = vcmp.le.f32.partialorder %v1723_v53, %v438_v23  ;;  %1470 = vmatprep.subr.bf16.mxu1 %v1571_v42 }
 0x44f   :  { %vm465_vm15 = vcmp.ge.f32.partialorder %v457_v25, 1e+30  ;;  %v458_v26 = vsel %vm450_vm14, 1e+30, %v1723_v53 }
 0x450   :  { %v473_v27 = vsel %vm465_vm15, 1.0, %v1590_v13  ;;  %vm466_vm0 = vcmp.ge.f32.partialorder %v458_v26, 1e+30  ;;  %1443 = vmatmul.mubr.msk.bf16.vlgmr.msra.gmra.mrb[8].mxu0 %vm170_vm1, %v1761_v24  ;;  %v441_v28 = vpop.xlane.xlu0 %440 }
 0x451   :  { %v474_v29 = vsel %vm466_vm0, 1.0, %v1590_v13  ;;  %vm451_vm2 = vcmp.le.f32.partialorder %v1728_v58, %v441_v28  ;;  %v444_v30 = vpop.xlane.xlu1 %443  ;;  %1451 = vmatpush3.bf16.msra.mxu0 %v1565_v7  ;;  %1471 = vmatpush3.bf16.msra.mxu1 %v1571_v42 }
 0x452   :  { %v1768_v31 = vpack.c.bf16 %v474_v29, %v473_v27  ;;  %v459_v32 = vsel %vm451_vm2, 1e+30, %v1728_v58  ;;  %vm452_vm3 = vcmp.le.f32.partialorder %v1736_v61, %v444_v30  ;;  %1472 = vmatprep.subr.bf16.mxu1 %v1572_v63 }
 0x453   :  { %vm467_vm4 = vcmp.ge.f32.partialorder %v459_v32, 1e+30  ;;  %v460_v33 = vsel %vm452_vm3, 1e+30, %v1736_v61 }
 0x454   :  { %v475_v34 = vsel %vm467_vm4, 1.0, %v1590_v13  ;;  %vm468_vm5 = vcmp.ge.f32.partialorder %v460_v33, 1e+30  ;;  %1446 = vmatprep.mubr.msk.bf16.mxu0 %vm170_vm1, %v1768_v31 }
 0x455   :  { %v476_v35 = vsel %vm468_vm5, 1.0, %v1590_v13  ;;  %1473 = vmatpush3.bf16.msra.mxu1 %v1572_v63 }
 0x456   :  { %v1775_v36 = vpack.c.bf16 %v476_v35, %v475_v34  ;;  %1474 = vmatprep.subr.bf16.mxu1 %v1573_v0 }
 0x458   :  { %1447 = vmatmul.mubr.msk.bf16.gmra.mrb[12].mxu0 %vm170_vm1, %v1775_v36 }
 0x459   :  { %1475 = vmatpush3.bf16.msra.mxu1 %v1573_v0 }
 0x523   :  { %v1444_v43 = vpop.f32.mrb[8].mxu0 }
 0x524   :  { %v539_v44 = vpop.f32.mrb[9].mxu0  ;;  %v572_v46 = vmul.f32 0.14285715, %v1444_v43 }
 0x525   :  { %v1445_v45 = vpop.f32.mrb[10].mxu0  ;;  %v570_v49 = vmul.f32 0.14285715, %v539_v44 }
 0x526   :  { %v573_v47 = vmul.f32 0.14285715, %v1445_v45  ;;  %v542_v48 = vpop.f32.mrb[11].mxu0 }
 0x527   :  { %v571_v50 = vmul.f32 0.14285715, %v542_v48  ;;  %v1577_v48 = vld [vmem:[%s1909_s5 + $0x18] sm:$0xff]  }
 0x528   :  { %v579_v51 = vpack.c.bf16 %v573_v47, %v572_v46  ;;  %v1575_v46 = vld [vmem:[%s1909_s5 + $0x8] sm:$0xff]   ;;  %v1576_v47 = vld [vmem:[%s1909_s5 + $0x10] sm:$0xff]  }
 0x529   :  { %v578_v52 = vpack.c.bf16 %v571_v50, %v570_v49  ;;  %v1578_v49 = vld [vmem:[%s1909_s5 + $0x20] sm:$0xff]   ;;  %v1579_v50 = vld [vmem:[%s1909_s5 + $0x28] sm:$0xff]  }
 0x52b   :  { %v1448_v53 = vpop.f32.mrb[12].mxu0  ;;  %1452 = vmatprep.mubr.msk.bf16.mxu0 %vm595_vm6, %v578_v52  ;;  %v1581_v52 = vld [vmem:[%s1909_s5 + $0x38] sm:$0xff]  }
 0x52c   :  { %v555_v54 = vpop.f32.mrb[13].mxu0  ;;  %1453 = vmatmul.mubr.msk.bf16.vlgmr.msra.gmra.mrb[16].mxu0 %vm595_vm6, %v579_v51  ;;  %v576_v56 = vmul.f32 0.14285715, %v1448_v53  ;;  %v1580_v51 = vld [vmem:[%s1909_s5 + $0x30] sm:$0xff]  }
 0x52d   :  { %v1449_v55 = vpop.f32.mrb[14].mxu0  ;;  %v574_v59 = vmul.f32 0.14285715, %v555_v54  ;;  %v1323_v54 = vld [vmem:[%s1908_s7 + $0x1] ss:$0 sm:$0xff] }
 0x52e   :  { %v577_v57 = vmul.f32 0.14285715, %v1449_v55  ;;  %v558_v58 = vpop.f32.mrb[15].mxu0 }
 0x52f   :  { %v575_v60 = vmul.f32 0.14285715, %v558_v58 }
 0x530   :  { %v581_v61 = vpack.c.bf16 %v577_v57, %v576_v56 }
 0x531   :  { %v580_v62 = vpack.c.bf16 %v575_v60, %v574_v59 }
 0x533   :  { %1456 = vmatprep.mubr.msk.bf16.mxu0 %vm595_vm6, %v580_v62 }
 0x534   :  { %1457 = vmatmul.mubr.msk.bf16.gmra.mrb[20].mxu0 %vm595_vm6, %v581_v61 }
 0x535   :  { %1492 = vmatprep.mubr.msk.bf16.mxu0 %vm170_vm1, %v1757_v17 }
 0x5ff   :  { %v1454_v2 = vpop.f32.mrb[16].mxu0 }
 0x600   :  { %v651_v3 = vadd.f32 %v1454_v2, %v1305_v1  ;;  %v642_v4 = vpop.f32.mrb[17].mxu0 }
 0x601   :  { %v643_v5 = vadd.f32 %v1305_v1, %v642_v4  ;;  %v1455_v6 = vpop.f32.mrb[18].mxu0 }
 0x602   :  { %v654_v7 = vadd.f32 %v1455_v6, %v1305_v1  ;;  %v645_v8 = vpop.f32.mrb[19].mxu0  ;;  %v675_v10 = vmax.f32 %v651_v3, 0.0 }
 0x603   :  { %v646_v9 = vadd.f32 %v1305_v1, %v645_v8  ;;  %v673_v12 = vmax.f32 %v643_v5, 0.0 }
 0x604   :  { %v676_v11 = vmax.f32 %v654_v7, 0.0 }
 0x605   :  { %v674_v13 = vmax.f32 %v646_v9, 0.0 }
 0x606   :  { %v682_v14 = vpack.c.bf16 %v676_v11, %v675_v10 }
 0x607   :  { %v1458_v15 = vpop.f32.mrb[20].mxu0  ;;  %v681_v16 = vpack.c.bf16 %v674_v13, %v673_v12 }
 0x608   :  { %v667_v18 = vadd.f32 %v1458_v15, %v1305_v1  ;;  %v658_v19 = vpop.f32.mrb[21].mxu0 }
 0x609   :  { %v659_v20 = vadd.f32 %v1305_v1, %v658_v19  ;;  %v1459_v21 = vpop.f32.mrb[22].mxu0  ;;  %1476 = vmatprep.mubr.bf16.mxu1 %v681_v16 }
 0x60a   :  { %v670_v22 = vadd.f32 %v1459_v21, %v1305_v1  ;;  %v661_v23 = vpop.f32.mrb[23].mxu0  ;;  %1477 = vmatmul.mubr.bf16.vlgmr.msra.gmra.mrb[0].mxu1 %v682_v14  ;;  %v679_v26 = vmax.f32 %v667_v18, 0.0 }
 0x60b   :  { %v662_v25 = vadd.f32 %v1305_v1, %v661_v23  ;;  %v677_v28 = vmax.f32 %v659_v20, 0.0 }
 0x60c   :  { %v680_v27 = vmax.f32 %v670_v22, 0.0 }
 0x60d   :  { %v678_v29 = vmax.f32 %v662_v25, 0.0 }
 0x60e   :  { %v684_v30 = vpack.c.bf16 %v680_v27, %v679_v26 }
 0x60f   :  { %v683_v32 = vpack.c.bf16 %v678_v29, %v677_v28 }
 0x611   :  { %1480 = vmatprep.mubr.bf16.mxu1 %v683_v32 }
 0x612   :  { %1481 = vmatmul.mubr.bf16.gmra.mrb[4].mxu1 %v684_v30 }
 0x613   :  { %1532 = vmatprep.mubr.msk.bf16.mxu1 %vm170_vm1, %v1757_v17  ;;  %v1574_v17 = vld [vmem:[%s1909_s5] sm:$0xff]  }
 0x6dd   :  { %v1478_v33 = vpop.f32.mrb[0].mxu1 }
 0x6de   :  { %v783_v34 = vpop.f32.mrb[1].mxu1 }
 0x6df   :  { %v1479_v35 = vpop.f32.mrb[2].mxu1 }
 0x6e0   :  { %v815_v37 = vpack.c.bf16 %v1479_v35, %v1478_v33  ;;  %v786_v38 = vpop.f32.mrb[3].mxu1 }
 0x6e1   :  { %v814_v39 = vpack.c.bf16 %v786_v38, %v783_v34 }
 0x6e3   :  { %1484 = vmatprep.subr.bf16.mxu0 %v814_v39 }
 0x6e4   :  { %1485 = vmatpush3.bf16.msra.mxu0 %v814_v39 }
 0x6e5   :  { %v1482_v40 = vpop.f32.mrb[4].mxu1  ;;  %1486 = vmatprep.subr.bf16.mxu0 %v815_v37 }
 0x6e6   :  { %v799_v41 = vpop.f32.mrb[5].mxu1 }
 0x6e7   :  { %v1483_v42 = vpop.f32.mrb[6].mxu1 }
 0x6e8   :  { %v817_v43 = vpack.c.bf16 %v1483_v42, %v1482_v40  ;;  %v802_v44 = vpop.f32.mrb[7].mxu1  ;;  %1487 = vmatpush3.bf16.msra.mxu0 %v815_v37  ;;  %v1582_v42 = vld [vmem:[%s1910_s6] sm:$0xff]  }
 0x6e9   :  { %v816_v45 = vpack.c.bf16 %v802_v44, %v799_v41  ;;  %v1584_v44 = vld [vmem:[%s1910_s6 + $0x10] sm:$0xff]  }
 0x6eb   :  { %1488 = vmatprep.subr.bf16.mxu0 %v816_v45 }
 0x6ec   :  { %1489 = vmatpush3.bf16.msra.mxu0 %v816_v45  ;;  %v1585_v45 = vld [vmem:[%s1910_s6 + $0x18] sm:$0xff]  }
 0x6ed   :  { %1490 = vmatprep.subr.bf16.mxu0 %v817_v43 }
 0x6f0   :  { %1491 = vmatpush3.bf16.msra.mxu0 %v817_v43  ;;  %v1583_v43 = vld [vmem:[%s1910_s6 + $0x8] sm:$0xff]  }
 0x6f1   :  { %1500 = vmatprep.subr.bf16.mxu0 %v1574_v17 }
 0x6f3   :  { %1493 = vmatmul.mubr.msk.bf16.vlgmr.msra.gmra.mrb[24].mxu0 %vm170_vm1, %v1761_v24 }
 0x6f4   :  { %1496 = vmatprep.mubr.msk.bf16.mxu0 %vm170_vm1, %v1768_v31  ;;  %1501 = vmatpush3.bf16.msra.mxu0 %v1574_v17  ;;  %v1588_v17 = vld [vmem:[%s1910_s6 + $0x30] sm:$0xff]  }
 0x6f5   :  { %1502 = vmatprep.subr.bf16.mxu0 %v1575_v46 }
 0x6f8   :  { %1503 = vmatpush3.bf16.msra.mxu0 %v1575_v46 }
 0x6f9   :  { %1504 = vmatprep.subr.bf16.mxu0 %v1576_v47 }
 0x6fb   :  { %1497 = vmatmul.mubr.msk.bf16.gmra.mrb[28].mxu0 %vm170_vm1, %v1775_v36 }
 0x6fc   :  { %1505 = vmatpush3.bf16.msra.mxu0 %v1576_v47  ;;  %v1336_v47 = vld [vmem:[%s1908_s7 + $0x2] ss:$0 sm:$0xff] }
 0x6fd   :  { %1506 = vmatprep.subr.bf16.mxu0 %v1577_v48 }
 0x700   :  { %1507 = vmatpush3.bf16.msra.mxu0 %v1577_v48 }
 0x701   :  { %1508 = vmatprep.subr.bf16.mxu0 %v1578_v49 }
 0x704   :  { %1509 = vmatpush3.bf16.msra.mxu0 %v1578_v49 }
 0x705   :  { %1510 = vmatprep.subr.bf16.mxu0 %v1579_v50 }
 0x708   :  { %1511 = vmatpush3.bf16.msra.mxu0 %v1579_v50 }
 0x709   :  { %1512 = vmatprep.subr.bf16.mxu0 %v1580_v51 }
 0x70c   :  { %1513 = vmatpush3.bf16.msra.mxu0 %v1580_v51 }
 0x70d   :  { %1514 = vmatprep.subr.bf16.mxu0 %v1581_v52 }
 0x710   :  { %1515 = vmatpush3.bf16.msra.mxu0 %v1581_v52 }
 0x7c6   :  { %v1494_v53 = vpop.f32.mrb[24].mxu0 }
 0x7c7   :  { %v885_v55 = vmul.f32 0.14285715, %v1494_v53  ;;  %v852_v56 = vpop.f32.mrb[25].mxu0 }
 0x7c8   :  { %v883_v57 = vmul.f32 0.14285715, %v852_v56  ;;  %v1495_v58 = vpop.f32.mrb[26].mxu0 }
 0x7c9   :  { %v898_v59 = vadd.f32 %v1323_v54, %v885_v55  ;;  %v886_v60 = vmul.f32 0.14285715, %v1495_v58  ;;  %v855_v61 = vpop.f32.mrb[27].mxu0 }
 0x7ca   :  { %v896_v62 = vadd.f32 %v1323_v54, %v883_v57  ;;  %v884_v63 = vmul.f32 0.14285715, %v855_v61 }
 0x7cb   :  { %v899_v0 = vadd.f32 %v1323_v54, %v886_v60  ;;  %v906_v2 = vmax.f32 %v898_v59, 0.0 }
 0x7cc   :  { %v897_v1 = vadd.f32 %v1323_v54, %v884_v63  ;;  %v904_v4 = vmax.f32 %v896_v62, 0.0 }
 0x7cd   :  { %v907_v3 = vmax.f32 %v899_v0, 0.0 }
 0x7ce   :  { %v905_v5 = vmax.f32 %v897_v1, 0.0  ;;  %v1498_v6 = vpop.f32.mrb[28].mxu0 }
 0x7cf   :  { %v913_v7 = vpack.c.bf16 %v907_v3, %v906_v2  ;;  %v889_v8 = vmul.f32 0.14285715, %v1498_v6  ;;  %v868_v9 = vpop.f32.mrb[29].mxu0 }
 0x7d0   :  { %v887_v10 = vmul.f32 0.14285715, %v868_v9  ;;  %v1499_v11 = vpop.f32.mrb[30].mxu0  ;;  %v912_v12 = vpack.c.bf16 %v905_v5, %v904_v4 }
 0x7d1   :  { %v902_v13 = vadd.f32 %v1323_v54, %v889_v8  ;;  %v890_v14 = vmul.f32 0.14285715, %v1499_v11  ;;  %v871_v15 = vpop.f32.mrb[31].mxu0 }
 0x7d2   :  { %v900_v16 = vadd.f32 %v1323_v54, %v887_v10  ;;  %v888_v18 = vmul.f32 0.14285715, %v871_v15  ;;  %1516 = vmatprep.mubr.bf16.mxu0 %v912_v12 }
 0x7d3   :  { %v903_v19 = vadd.f32 %v1323_v54, %v890_v14  ;;  %1517 = vmatmul.mubr.bf16.vlgmr.msra.gmra.mrb[32].mxu0 %v913_v7  ;;  %v910_v21 = vmax.f32 %v902_v13, 0.0 }
 0x7d4   :  { %v901_v20 = vadd.f32 %v1323_v54, %v888_v18  ;;  %v908_v23 = vmax.f32 %v900_v16, 0.0 }
 0x7d5   :  { %v911_v22 = vmax.f32 %v903_v19, 0.0 }
 0x7d6   :  { %v909_v25 = vmax.f32 %v901_v20, 0.0  ;;  %v1337_v20 = vld [vmem:[%s1908_s7 + $0x3] ss:$0 sm:$0xff] }
 0x7d7   :  { %v915_v26 = vpack.c.bf16 %v911_v22, %v910_v21 }
 0x7d8   :  { %v914_v27 = vpack.c.bf16 %v909_v25, %v908_v23 }
 0x7da   :  { %1520 = vmatprep.mubr.bf16.mxu0 %v914_v27 }
 0x7db   :  { %1521 = vmatmul.mubr.bf16.gmra.mrb[36].mxu0 %v915_v26 }
 0x8a6   :  { %v1518_v28 = vpop.f32.mrb[32].mxu0 }
 0x8a7   :  { %v1014_v29 = vpop.f32.mrb[33].mxu0 }
 0x8a8   :  { %v1519_v30 = vpop.f32.mrb[34].mxu0 }
 0x8a9   :  { %v1046_v32 = vpack.c.bf16 %v1519_v30, %v1518_v28  ;;  %v1017_v33 = vpop.f32.mrb[35].mxu0 }
 0x8aa   :  { %v1045_v34 = vpack.c.bf16 %v1017_v33, %v1014_v29 }
 0x8ac   :  { %1524 = vmatprep.subr.bf16.mxu1 %v1045_v34 }
 0x8ad   :  { %1525 = vmatpush3.bf16.msra.mxu1 %v1045_v34 }
 0x8ae   :  { %v1522_v35 = vpop.f32.mrb[36].mxu0  ;;  %1526 = vmatprep.subr.bf16.mxu1 %v1046_v32 }
 0x8af   :  { %v1030_v37 = vpop.f32.mrb[37].mxu0 }
 0x8b0   :  { %v1523_v38 = vpop.f32.mrb[38].mxu0 }
 0x8b1   :  { %v1048_v39 = vpack.c.bf16 %v1523_v38, %v1522_v35  ;;  %v1033_v40 = vpop.f32.mrb[39].mxu0  ;;  %1527 = vmatpush3.bf16.msra.mxu1 %v1046_v32 }
 0x8b2   :  { %v1047_v41 = vpack.c.bf16 %v1033_v40, %v1030_v37 }
 0x8b4   :  { %1528 = vmatprep.subr.bf16.mxu1 %v1047_v41 }
 0x8b5   :  { %1529 = vmatpush3.bf16.msra.mxu1 %v1047_v41 }
 0x8b6   :  { %1530 = vmatprep.subr.bf16.mxu1 %v1048_v39 }
 0x8b9   :  { %1531 = vmatpush3.bf16.msra.mxu1 %v1048_v39 }
 0x8ba   :  { %1540 = vmatprep.subr.bf16.mxu1 %v1582_v42 }
 0x8bc   :  { %1533 = vmatmul.mubr.msk.bf16.vlgmr.msra.gmra.mrb[8].mxu1 %vm170_vm1, %v1761_v24  ;;  %v1586_v24 = vld [vmem:[%s1910_s6 + $0x20] sm:$0xff]  }
 0x8bd   :  { %1536 = vmatprep.mubr.msk.bf16.mxu1 %vm170_vm1, %v1768_v31  ;;  %1541 = vmatpush3.bf16.msra.mxu1 %v1582_v42  ;;  %v1587_v31 = vld [vmem:[%s1910_s6 + $0x28] sm:$0xff]  }
 0x8be   :  { %1542 = vmatprep.subr.bf16.mxu1 %v1583_v43 }
 0x8c1   :  { %1543 = vmatpush3.bf16.msra.mxu1 %v1583_v43 }
 0x8c2   :  { %1544 = vmatprep.subr.bf16.mxu1 %v1584_v44 }
 0x8c4   :  { %1537 = vmatmul.mubr.msk.bf16.gmra.mrb[12].mxu1 %vm170_vm1, %v1775_v36  ;;  %v1589_v36 = vld [vmem:[%s1910_s6 + $0x38] sm:$0xff]  }
 0x8c5   :  { %1545 = vmatpush3.bf16.msra.mxu1 %v1584_v44 }
 0x8c6   :  { %1546 = vmatprep.subr.bf16.mxu1 %v1585_v45 }
 0x8c9   :  { %1547 = vmatpush3.bf16.msra.mxu1 %v1585_v45 }
 0x8ca   :  { %1548 = vmatprep.subr.bf16.mxu1 %v1586_v24 }
 0x8cd   :  { %1549 = vmatpush3.bf16.msra.mxu1 %v1586_v24 }
 0x8ce   :  { %1550 = vmatprep.subr.bf16.mxu1 %v1587_v31 }
 0x8d1   :  { %1551 = vmatpush3.bf16.msra.mxu1 %v1587_v31 }
 0x8d2   :  { %1552 = vmatprep.subr.bf16.mxu1 %v1588_v17 }
 0x8d5   :  { %1553 = vmatpush3.bf16.msra.mxu1 %v1588_v17 }
 0x8d6   :  { %1554 = vmatprep.subr.bf16.mxu1 %v1589_v36 }
 0x8d9   :  { %1555 = vmatpush3.bf16.msra.mxu1 %v1589_v36 }
 0x98f   :  { %v1534_v46 = vpop.f32.mrb[8].mxu1 }
 0x990   :  { %v1116_v48 = vmul.f32 0.14285715, %v1534_v46  ;;  %v1083_v49 = vpop.f32.mrb[9].mxu1 }
 0x991   :  { %v1114_v50 = vmul.f32 0.14285715, %v1083_v49  ;;  %v1535_v51 = vpop.f32.mrb[10].mxu1 }
 0x992   :  { %v1129_v52 = vadd.f32 %v1336_v47, %v1116_v48  ;;  %v1117_v53 = vmul.f32 0.14285715, %v1535_v51  ;;  %v1086_v54 = vpop.f32.mrb[11].mxu1 }
 0x993   :  { %v1127_v55 = vadd.f32 %v1336_v47, %v1114_v50  ;;  %v1115_v56 = vmul.f32 0.14285715, %v1086_v54 }
 0x994   :  { %v1130_v57 = vadd.f32 %v1336_v47, %v1117_v53  ;;  %v1137_v59 = vmax.f32 %v1129_v52, 0.0 }
 0x995   :  { %v1128_v58 = vadd.f32 %v1336_v47, %v1115_v56  ;;  %v1135_v61 = vmax.f32 %v1127_v55, 0.0 }
 0x996   :  { %v1138_v60 = vmax.f32 %v1130_v57, 0.0 }
 0x997   :  { %v1136_v62 = vmax.f32 %v1128_v58, 0.0  ;;  %v1538_v63 = vpop.f32.mrb[12].mxu1 }
 0x998   :  { %v1144_v0 = vpack.c.bf16 %v1138_v60, %v1137_v59  ;;  %v1120_v1 = vmul.f32 0.14285715, %v1538_v63  ;;  %v1099_v2 = vpop.f32.mrb[13].mxu1 }
 0x999   :  { %v1118_v3 = vmul.f32 0.14285715, %v1099_v2  ;;  %v1539_v4 = vpop.f32.mrb[14].mxu1  ;;  %v1143_v5 = vpack.c.bf16 %v1136_v62, %v1135_v61 }
 0x99a   :  { %v1133_v6 = vadd.f32 %v1336_v47, %v1120_v1  ;;  %v1121_v7 = vmul.f32 0.14285715, %v1539_v4  ;;  %v1102_v8 = vpop.f32.mrb[15].mxu1 }
 0x99b   :  { %v1131_v9 = vadd.f32 %v1336_v47, %v1118_v3  ;;  %v1119_v10 = vmul.f32 0.14285715, %v1102_v8  ;;  %1556 = vmatprep.mubr.bf16.mxu1 %v1143_v5 }
 0x99c   :  { %v1134_v11 = vadd.f32 %v1336_v47, %v1121_v7  ;;  %1557 = vmatmul.mubr.bf16.vlgmr.msra.gmra.mrb[16].mxu1 %v1144_v0  ;;  %v1141_v13 = vmax.f32 %v1133_v6, 0.0 }
 0x99d   :  { %v1132_v12 = vadd.f32 %v1336_v47, %v1119_v10  ;;  %v1139_v15 = vmax.f32 %v1131_v9, 0.0 }
 0x99e   :  { %v1142_v14 = vmax.f32 %v1134_v11, 0.0 }
 0x99f   :  { %v1140_v16 = vmax.f32 %v1132_v12, 0.0 }
 0x9a0   :  { %v1146_v18 = vpack.c.bf16 %v1142_v14, %v1141_v13 }
 0x9a1   :  { %v1145_v19 = vpack.c.bf16 %v1140_v16, %v1139_v15 }
 0x9a3   :  { %1560 = vmatprep.mubr.bf16.mxu1 %v1145_v19 }
 0x9a4   :  { %1561 = vmatmul.mubr.bf16.gmra.mrb[20].mxu1 %v1146_v18 }
 0xa6f   :  { %v1558_v21 = vpop.f32.mrb[16].mxu1 }
 0xa70   :  { %v1259_v22 = vadd.f32 %v1558_v21, %v1337_v20  ;;  %v1250_v23 = vpop.f32.mrb[17].mxu1 }
 0xa71   :  { %v1251_v25 = vadd.f32 %v1337_v20, %v1250_v23  ;;  %v1559_v26 = vpop.f32.mrb[18].mxu1 }
 0xa72   :  { %1283 = vst [vmem:[%s1911_s8 + $0x10] sm:$0xff] %v1259_v22  ;;  %v1262_v27 = vadd.f32 %v1559_v26, %v1337_v20  ;;  %v1253_v28 = vpop.f32.mrb[19].mxu1 }
 0xa73   :  { %1281 = vst [vmem:[%s1911_s8] sm:$0xff] %v1251_v25  ;;  %v1254_v29 = vadd.f32 %v1337_v20, %v1253_v28 }
 0xa74   :  { %1284 = vst [vmem:[%s1911_s8 + $0x18] sm:$0xff] %v1262_v27 }
 0xa75   :  { %1282 = vst [vmem:[%s1911_s8 + $0x8] sm:$0xff] %v1254_v29 }
 0xa77   :  { %v1562_v30 = vpop.f32.mrb[20].mxu1 }
 0xa78   :  { %v1275_v32 = vadd.f32 %v1562_v30, %v1337_v20  ;;  %v1266_v33 = vpop.f32.mrb[21].mxu1 }
 0xa79   :  { %v1267_v34 = vadd.f32 %v1337_v20, %v1266_v33  ;;  %v1563_v35 = vpop.f32.mrb[22].mxu1 }
 0xa7a   :  { %1287 = vst [vmem:[%s1911_s8 + $0x30] sm:$0xff] %v1275_v32  ;;  %v1278_v37 = vadd.f32 %v1563_v35, %v1337_v20  ;;  %v1269_v38 = vpop.f32.mrb[23].mxu1 }
 0xa7b   :  { %1285 = vst [vmem:[%s1911_s8 + $0x20] sm:$0xff] %v1267_v34  ;;  %v1270_v39 = vadd.f32 %v1337_v20, %v1269_v38 }
 0xa7c   :  { %1288 = vst [vmem:[%s1911_s8 + $0x38] sm:$0xff] %v1278_v37 }
 0xa7d   :  { %1286 = vst [vmem:[%s1911_s8 + $0x28] sm:$0xff] %v1270_v39 }

</bundles_post_ra>
